<compile_context>
chip_gen: v7x
topology: tpu7x:2x2x1
jax: 0.10.0
libtpu: 0.0.40
codegen_flags: <defaults>
</compile_context>

<pallas_src>
import functools

import jax
import jax.numpy as jnp
from jax import lax
from jax.experimental import pallas as pl
from jax.experimental.pallas import tpu as pltpu


# ------------------------------ fused kernel ------------------------------- #

def _cross_attention_kernel(x_ref, enc_ref, wq_ref, wkv_ref, wo_ref, bo_ref,
                            o_ref, *, heads, dim_head, scale):
    """Fused CrossAttention forward for one batch element.

    x_ref   : (1, Sq,  query_dim)      hidden_states slice (streamed per batch)
    enc_ref : (1, Skv, cross_dim)      encoder_hidden_states slice
    wq_ref  : (query_dim, inner_dim)   pre-transposed to_q weight   (resident)
    wkv_ref : (cross_dim, 2*inner_dim) pre-transposed fused to_k|to_v (resident)
    wo_ref  : (inner_dim, query_dim)   pre-transposed to_out[0] weight (resident)
    bo_ref  : (1, query_dim)           to_out[0] bias               (resident)
    o_ref   : (1, Sq, query_dim)
    """
    inner_dim = heads * dim_head
    x = x_ref[0]          # (Sq, query_dim)
    enc = enc_ref[0]      # (Skv, cross_dim)

    # ---- Q and fused K|V projections (MXU, fp32 accumulation) ----
    q = jnp.dot(x, wq_ref[...], preferred_element_type=jnp.float32)     # (Sq, inner)
    kv = jnp.dot(enc, wkv_ref[...], preferred_element_type=jnp.float32)  # (Skv, 2*inner)
    k = kv[:, :inner_dim]
    v = kv[:, inner_dim:]

    # Fold the attention scale into Q once (scale*(q@k^T) == (scale*q)@k^T).
    q = q * scale

    # ---- multi-head attention: all heads handled in this grid step ----
    head_outs = []
    for h in range(heads):                       # static unroll, heads is small
        lo = h * dim_head
        hi = lo + dim_head
        qh = q[:, lo:hi]                         # (Sq, dh)
        kh = k[:, lo:hi]                         # (Skv, dh)
        vh = v[:, lo:hi]                         # (Skv, dh)
        # scores = qh @ kh^T expressed as a contraction of the last dims
        # (no transpose op / VMEM relayout).
        s = lax.dot_general(qh, kh, (((1,), (1,)), ((), ())),
                            preferred_element_type=jnp.float32)          # (Sq, Skv)
        # numerically-stable softmax over keys
        s = s - jnp.max(s, axis=-1, keepdims=True)
        p = jnp.exp(s)
        denom = jnp.sum(p, axis=-1, keepdims=True)
        p = p * pl.reciprocal(denom, approx=True)   # EUP vrcp, off the VPU path
        head_outs.append(jnp.dot(p, vh, preferred_element_type=jnp.float32))

    attn = jnp.concatenate(head_outs, axis=-1)      # (Sq, inner_dim)

    # ---- output projection (+ bias); Dropout(p=0.0) is identity ----
    out = jnp.dot(attn, wo_ref[...], preferred_element_type=jnp.float32)
    out = out + bo_ref[...]
    o_ref[0] = out.astype(o_ref.dtype)


# ------------------------------ wrapper ------------------------------------ #

def cross_attention_forward(params, hidden_states, encoder_hidden_states=None,
                            *, heads, dim_head):
    """Pallas implementation of CrossAttention.forward (standard path)."""
    B, Sq, query_dim = hidden_states.shape
    if encoder_hidden_states is None:
        encoder_hidden_states = hidden_states
    Skv, cross_dim = encoder_hidden_states.shape[1:]
    inner_dim = heads * dim_head
    scale = dim_head ** (-0.5)

    # One-time weight prep outside the kernel:
    #  - transpose torch (out, in) layout to (in, out) so the MXU consumes it
    #    directly (no in-kernel .T),
    #  - fuse the K and V projections into a single matmul.
    wq = params["to_q_w"].T                                     # (query_dim, inner)
    wkv = jnp.concatenate([params["to_k_w"].T,
                           params["to_v_w"].T], axis=1)         # (cross, 2*inner)
    wo = params["to_out_w"].T                                   # (inner, query_dim)
    bo = params["to_out_b"].reshape(1, query_dim)

    kernel = functools.partial(_cross_attention_kernel, heads=heads,
                               dim_head=dim_head, scale=scale)

    return pl.pallas_call(
        kernel,
        out_shape=jax.ShapeDtypeStruct((B, Sq, query_dim), hidden_states.dtype),
        grid_spec=pltpu.PrefetchScalarGridSpec(
            num_scalar_prefetch=0,
            grid=(B,),
            in_specs=[
                # activations: one batch slice per grid step (pipelined)
                pl.BlockSpec((1, Sq, query_dim), lambda b: (b, 0, 0)),
                pl.BlockSpec((1, Skv, cross_dim), lambda b: (b, 0, 0)),
                # weights / bias: constant index_map -> resident across grid
                pl.BlockSpec((query_dim, inner_dim), lambda b: (0, 0)),
                pl.BlockSpec((cross_dim, 2 * inner_dim), lambda b: (0, 0)),
                pl.BlockSpec((inner_dim, query_dim), lambda b: (0, 0)),
                pl.BlockSpec((1, query_dim), lambda b: (0, 0)),
            ],
            out_specs=pl.BlockSpec((1, Sq, query_dim), lambda b: (b, 0, 0)),
        ),
        compiler_params=pltpu.CompilerParams(
            dimension_semantics=("parallel",),
        ),
    )(hidden_states, encoder_hidden_states, wq, wkv, wo, bo)


# ------------------------------ params / reference ------------------------- #

def init_params(key, query_dim, cross_attention_dim, heads, dim_head):
    """Parameters in torch nn.Linear layout: weight (out_features, in_features)."""
    inner_dim = heads * dim_head
    ks = jax.random.split(key, 5)
    std = 0.02

    def w(k, shape):
        return jax.random.normal(k, shape, dtype=jnp.float32) * std

    return {
        "to_q_w": w(ks[0], (inner_dim, query_dim)),
        "to_k_w": w(ks[1], (inner_dim, cross_attention_dim)),
        "to_v_w": w(ks[2], (inner_dim, cross_attention_dim)),
        "to_out_w": w(ks[3], (query_dim, inner_dim)),
        "to_out_b": w(ks[4], (query_dim,)),
    }


def cross_attention_reference(params, hidden_states, encoder_hidden_states=None,
                              *, heads, dim_head):
    """Pure-JAX reference matching the torch module's math."""
    if encoder_hidden_states is None:
        encoder_hidden_states = hidden_states
    scale = dim_head ** (-0.5)
    q = hidden_states @ params["to_q_w"].T
    k = encoder_hidden_states @ params["to_k_w"].T
    v = encoder_hidden_states @ params["to_v_w"].T
    B, Sq, inner = q.shape
    Skv = k.shape[1]
    q = q.reshape(B, Sq, heads, dim_head)
    k = k.reshape(B, Skv, heads, dim_head)
    v = v.reshape(B, Skv, heads, dim_head)
    s = jnp.einsum("bqhd,bkhd->bhqk", q, k) * scale
    p = jax.nn.softmax(s, axis=-1)
    o = jnp.einsum("bhqk,bkhd->bqhd", p, v).reshape(B, Sq, inner)
    return o @ params["to_out_w"].T + params["to_out_b"]


# ------------------------------ demo / check -------------------------------- #

if __name__ == "__main__":
    B, Sq, Skv = 2, 16, 8
    query_dim = 32
    cross_attention_dim = 32
    heads = 4
    dim_head = 8

    key = jax.random.PRNGKey(0)
    k_params, k_x, k_enc = jax.random.split(key, 3)

    params = init_params(k_params, query_dim, cross_attention_dim, heads, dim_head)
    hidden_states = jax.random.normal(k_x, (B, Sq, query_dim), dtype=jnp.float32)
    encoder_hidden_states = jax.random.normal(
        k_enc, (B, Skv, cross_attention_dim), dtype=jnp.float32)

    out = cross_attention_forward(params, hidden_states, encoder_hidden_states,
                                  heads=heads, dim_head=dim_head)
    out = jax.block_until_ready(out)

    ref = cross_attention_reference(params, hidden_states, encoder_hidden_states,
                                    heads=heads, dim_head=dim_head)
    assert out.shape == (B, Sq, query_dim)
    # Tolerance loosened slightly vs exact fp32 because the softmax denominator
    # uses the EUP approximate reciprocal.
    assert jnp.allclose(out, ref, atol=1e-3, rtol=1e-3), "mismatch vs reference"

    print("KERNEL_OK")
</pallas_src>

<mosaic_0001>
module attributes {stable_mosaic.version = 11 : i64} {
  func.func @_cross_attention_kernel(%arg0: i32, %arg1: memref<1x16x32xf32, #tpu.memory_space<vmem>>, %arg2: memref<1x8x32xf32, #tpu.memory_space<vmem>>, %arg3: memref<32x32xf32, #tpu.memory_space<vmem>>, %arg4: memref<32x64xf32, #tpu.memory_space<vmem>>, %arg5: memref<32x32xf32, #tpu.memory_space<vmem>>, %arg6: memref<1x32xf32, #tpu.memory_space<vmem>>, %arg7: memref<1x16x32xf32, #tpu.memory_space<vmem>>) attributes {dimension_semantics = [#tpu.dimension_semantics<parallel>], iteration_bounds = array<i64: 2>, scalar_prefetch = 0 : i64, scratch_operands = 0 : i64, tpu.core_type = #tpu.core_type<tc>, window_params = [{transform_indices = @transform_0, window_bounds = array<i64: 1, 16, 32>}, {transform_indices = @transform_1, window_bounds = array<i64: 1, 8, 32>}, {pipeline_mode = #tpu.pipeline_mode<synchronous>, transform_indices = @transform_2, window_bounds = array<i64: 32, 32>}, {pipeline_mode = #tpu.pipeline_mode<synchronous>, transform_indices = @transform_3, window_bounds = array<i64: 32, 64>}, {pipeline_mode = #tpu.pipeline_mode<synchronous>, transform_indices = @transform_4, window_bounds = array<i64: 32, 32>}, {pipeline_mode = #tpu.pipeline_mode<synchronous>, transform_indices = @transform_5, window_bounds = array<i64: 1, 32>}, {transform_indices = @transform_6, window_bounds = array<i64: 1, 16, 32>}]} {
    %c0 = arith.constant 0 : index
    %c0_0 = arith.constant 0 : index
    %c0_1 = arith.constant 0 : index
    %0 = vector.load %arg1[%c0, %c0_0, %c0_1] : memref<1x16x32xf32, #tpu.memory_space<vmem>>, vector<1x16x32xf32>
    %1 = vector.shape_cast %0 : vector<1x16x32xf32> to vector<16x32xf32>
    %c0_2 = arith.constant 0 : index
    %c0_3 = arith.constant 0 : index
    %c0_4 = arith.constant 0 : index
    %2 = vector.load %arg2[%c0_2, %c0_3, %c0_4] : memref<1x8x32xf32, #tpu.memory_space<vmem>>, vector<1x8x32xf32>
    %3 = vector.shape_cast %2 : vector<1x8x32xf32> to vector<8x32xf32>
    %c0_5 = arith.constant 0 : index
    %c0_6 = arith.constant 0 : index
    %4 = vector.load %arg3[%c0_5, %c0_6] : memref<32x32xf32, #tpu.memory_space<vmem>>, vector<32x32xf32>
    %cst = arith.constant dense<0.000000e+00> : vector<16x32xf32>
    %5 = tpu.matmul %1, %4, %cst {dimension_numbers = #tpu.dot_dimension_numbers<[1], [0], [0], [1], [0, 0, 1, 1], [], []>} : vector<16x32xf32>, vector<32x32xf32>, vector<16x32xf32> -> vector<16x32xf32>
    %c0_7 = arith.constant 0 : index
    %c0_8 = arith.constant 0 : index
    %6 = vector.load %arg4[%c0_7, %c0_8] : memref<32x64xf32, #tpu.memory_space<vmem>>, vector<32x64xf32>
    %cst_9 = arith.constant dense<0.000000e+00> : vector<8x64xf32>
    %7 = tpu.matmul %3, %6, %cst_9 {dimension_numbers = #tpu.dot_dimension_numbers<[1], [0], [0], [1], [0, 0, 1, 1], [], []>} : vector<8x32xf32>, vector<32x64xf32>, vector<8x64xf32> -> vector<8x64xf32>
    %8 = vector.extract_strided_slice %7 {offsets = [0, 0], sizes = [8, 32], strides = [1, 1]} : vector<8x64xf32> to vector<8x32xf32>
    %9 = vector.extract_strided_slice %7 {offsets = [0, 32], sizes = [8, 32], strides = [1, 1]} : vector<8x64xf32> to vector<8x32xf32>
    %cst_10 = arith.constant 0.353553385 : f32
    %10 = vector.broadcast %cst_10 : f32 to vector<16x32xf32>
    %11 = arith.mulf %5, %10 : vector<16x32xf32>
    %12 = vector.extract_strided_slice %11 {offsets = [0, 0], sizes = [16, 8], strides = [1, 1]} : vector<16x32xf32> to vector<16x8xf32>
    %13 = vector.extract_strided_slice %8 {offsets = [0, 0], sizes = [8, 8], strides = [1, 1]} : vector<8x32xf32> to vector<8x8xf32>
    %14 = vector.extract_strided_slice %9 {offsets = [0, 0], sizes = [8, 8], strides = [1, 1]} : vector<8x32xf32> to vector<8x8xf32>
    %cst_11 = arith.constant dense<0.000000e+00> : vector<16x8xf32>
    %15 = tpu.matmul %12, %13, %cst_11 {dimension_numbers = #tpu.dot_dimension_numbers<[1], [1], [0], [0], [0, 0, 1, 0], [], []>} : vector<16x8xf32>, vector<8x8xf32>, vector<16x8xf32> -> vector<16x8xf32>
    %cst_12 = arith.constant dense<0xFF800000> : vector<16xf32>
    %16 = vector.multi_reduction <maximumf>, %15, %cst_12 [1] : vector<16x8xf32> to vector<16xf32>
    %17 = vector.shape_cast %16 : vector<16xf32> to vector<16x1xf32>
    %18 = vector.broadcast %17 : vector<16x1xf32> to vector<16x8xf32>
    %19 = arith.subf %15, %18 : vector<16x8xf32>
    %20 = math.exp %19 : vector<16x8xf32>
    %cst_13 = arith.constant dense<0.000000e+00> : vector<16xf32>
    %21 = vector.multi_reduction <add>, %20, %cst_13 [1] : vector<16x8xf32> to vector<16xf32>
    %22 = vector.shape_cast %21 : vector<16xf32> to vector<16x1xf32>
    %23 = tpu.reciprocal %22 {approx = true} : vector<16x1xf32> -> vector<16x1xf32>
    %24 = vector.broadcast %23 : vector<16x1xf32> to vector<16x8xf32>
    %25 = arith.mulf %20, %24 : vector<16x8xf32>
    %cst_14 = arith.constant dense<0.000000e+00> : vector<16x8xf32>
    %26 = tpu.matmul %25, %14, %cst_14 {dimension_numbers = #tpu.dot_dimension_numbers<[1], [0], [0], [1], [0, 0, 1, 1], [], []>} : vector<16x8xf32>, vector<8x8xf32>, vector<16x8xf32> -> vector<16x8xf32>
    %27 = vector.extract_strided_slice %11 {offsets = [0, 8], sizes = [16, 8], strides = [1, 1]} : vector<16x32xf32> to vector<16x8xf32>
    %28 = vector.extract_strided_slice %8 {offsets = [0, 8], sizes = [8, 8], strides = [1, 1]} : vector<8x32xf32> to vector<8x8xf32>
    %29 = vector.extract_strided_slice %9 {offsets = [0, 8], sizes = [8, 8], strides = [1, 1]} : vector<8x32xf32> to vector<8x8xf32>
    %cst_15 = arith.constant dense<0.000000e+00> : vector<16x8xf32>
    %30 = tpu.matmul %27, %28, %cst_15 {dimension_numbers = #tpu.dot_dimension_numbers<[1], [1], [0], [0], [0, 0, 1, 0], [], []>} : vector<16x8xf32>, vector<8x8xf32>, vector<16x8xf32> -> vector<16x8xf32>
    %cst_16 = arith.constant dense<0xFF800000> : vector<16xf32>
    %31 = vector.multi_reduction <maximumf>, %30, %cst_16 [1] : vector<16x8xf32> to vector<16xf32>
    %32 = vector.shape_cast %31 : vector<16xf32> to vector<16x1xf32>
    %33 = vector.broadcast %32 : vector<16x1xf32> to vector<16x8xf32>
    %34 = arith.subf %30, %33 : vector<16x8xf32>
    %35 = math.exp %34 : vector<16x8xf32>
    %cst_17 = arith.constant dense<0.000000e+00> : vector<16xf32>
    %36 = vector.multi_reduction <add>, %35, %cst_17 [1] : vector<16x8xf32> to vector<16xf32>
    %37 = vector.shape_cast %36 : vector<16xf32> to vector<16x1xf32>
    %38 = tpu.reciprocal %37 {approx = true} : vector<16x1xf32> -> vector<16x1xf32>
    %39 = vector.broadcast %38 : vector<16x1xf32> to vector<16x8xf32>
    %40 = arith.mulf %35, %39 : vector<16x8xf32>
    %cst_18 = arith.constant dense<0.000000e+00> : vector<16x8xf32>
    %41 = tpu.matmul %40, %29, %cst_18 {dimension_numbers = #tpu.dot_dimension_numbers<[1], [0], [0], [1], [0, 0, 1, 1], [], []>} : vector<16x8xf32>, vector<8x8xf32>, vector<16x8xf32> -> vector<16x8xf32>
    %42 = vector.extract_strided_slice %11 {offsets = [0, 16], sizes = [16, 8], strides = [1, 1]} : vector<16x32xf32> to vector<16x8xf32>
    %43 = vector.extract_strided_slice %8 {offsets = [0, 16], sizes = [8, 8], strides = [1, 1]} : vector<8x32xf32> to vector<8x8xf32>
    %44 = vector.extract_strided_slice %9 {offsets = [0, 16], sizes = [8, 8], strides = [1, 1]} : vector<8x32xf32> to vector<8x8xf32>
    %cst_19 = arith.constant dense<0.000000e+00> : vector<16x8xf32>
    %45 = tpu.matmul %42, %43, %cst_19 {dimension_numbers = #tpu.dot_dimension_numbers<[1], [1], [0], [0], [0, 0, 1, 0], [], []>} : vector<16x8xf32>, vector<8x8xf32>, vector<16x8xf32> -> vector<16x8xf32>
    %cst_20 = arith.constant dense<0xFF800000> : vector<16xf32>
    %46 = vector.multi_reduction <maximumf>, %45, %cst_20 [1] : vector<16x8xf32> to vector<16xf32>
    %47 = vector.shape_cast %46 : vector<16xf32> to vector<16x1xf32>
    %48 = vector.broadcast %47 : vector<16x1xf32> to vector<16x8xf32>
    %49 = arith.subf %45, %48 : vector<16x8xf32>
    %50 = math.exp %49 : vector<16x8xf32>
    %cst_21 = arith.constant dense<0.000000e+00> : vector<16xf32>
    %51 = vector.multi_reduction <add>, %50, %cst_21 [1] : vector<16x8xf32> to vector<16xf32>
    %52 = vector.shape_cast %51 : vector<16xf32> to vector<16x1xf32>
    %53 = tpu.reciprocal %52 {approx = true} : vector<16x1xf32> -> vector<16x1xf32>
    %54 = vector.broadcast %53 : vector<16x1xf32> to vector<16x8xf32>
    %55 = arith.mulf %50, %54 : vector<16x8xf32>
    %cst_22 = arith.constant dense<0.000000e+00> : vector<16x8xf32>
    %56 = tpu.matmul %55, %44, %cst_22 {dimension_numbers = #tpu.dot_dimension_numbers<[1], [0], [0], [1], [0, 0, 1, 1], [], []>} : vector<16x8xf32>, vector<8x8xf32>, vector<16x8xf32> -> vector<16x8xf32>
    %57 = vector.extract_strided_slice %11 {offsets = [0, 24], sizes = [16, 8], strides = [1, 1]} : vector<16x32xf32> to vector<16x8xf32>
    %58 = vector.extract_strided_slice %8 {offsets = [0, 24], sizes = [8, 8], strides = [1, 1]} : vector<8x32xf32> to vector<8x8xf32>
    %59 = vector.extract_strided_slice %9 {offsets = [0, 24], sizes = [8, 8], strides = [1, 1]} : vector<8x32xf32> to vector<8x8xf32>
    %cst_23 = arith.constant dense<0.000000e+00> : vector<16x8xf32>
    %60 = tpu.matmul %57, %58, %cst_23 {dimension_numbers = #tpu.dot_dimension_numbers<[1], [1], [0], [0], [0, 0, 1, 0], [], []>} : vector<16x8xf32>, vector<8x8xf32>, vector<16x8xf32> -> vector<16x8xf32>
    %cst_24 = arith.constant dense<0xFF800000> : vector<16xf32>
    %61 = vector.multi_reduction <maximumf>, %60, %cst_24 [1] : vector<16x8xf32> to vector<16xf32>
    %62 = vector.shape_cast %61 : vector<16xf32> to vector<16x1xf32>
    %63 = vector.broadcast %62 : vector<16x1xf32> to vector<16x8xf32>
    %64 = arith.subf %60, %63 : vector<16x8xf32>
    %65 = math.exp %64 : vector<16x8xf32>
    %cst_25 = arith.constant dense<0.000000e+00> : vector<16xf32>
    %66 = vector.multi_reduction <add>, %65, %cst_25 [1] : vector<16x8xf32> to vector<16xf32>
    %67 = vector.shape_cast %66 : vector<16xf32> to vector<16x1xf32>
    %68 = tpu.reciprocal %67 {approx = true} : vector<16x1xf32> -> vector<16x1xf32>
    %69 = vector.broadcast %68 : vector<16x1xf32> to vector<16x8xf32>
    %70 = arith.mulf %65, %69 : vector<16x8xf32>
    %cst_26 = arith.constant dense<0.000000e+00> : vector<16x8xf32>
    %71 = tpu.matmul %70, %59, %cst_26 {dimension_numbers = #tpu.dot_dimension_numbers<[1], [0], [0], [1], [0, 0, 1, 1], [], []>} : vector<16x8xf32>, vector<8x8xf32>, vector<16x8xf32> -> vector<16x8xf32>
    %72 = tpu.concatenate %26, %41, %56, %71 in 1 : vector<16x8xf32>, vector<16x8xf32>, vector<16x8xf32>, vector<16x8xf32> -> vector<16x32xf32>
    %c0_27 = arith.constant 0 : index
    %c0_28 = arith.constant 0 : index
    %73 = vector.load %arg5[%c0_27, %c0_28] : memref<32x32xf32, #tpu.memory_space<vmem>>, vector<32x32xf32>
    %cst_29 = arith.constant dense<0.000000e+00> : vector<16x32xf32>
    %74 = tpu.matmul %72, %73, %cst_29 {dimension_numbers = #tpu.dot_dimension_numbers<[1], [0], [0], [1], [0, 0, 1, 1], [], []>} : vector<16x32xf32>, vector<32x32xf32>, vector<16x32xf32> -> vector<16x32xf32>
    %c0_30 = arith.constant 0 : index
    %c0_31 = arith.constant 0 : index
    %75 = vector.load %arg6[%c0_30, %c0_31] : memref<1x32xf32, #tpu.memory_space<vmem>>, vector<1x32xf32>
    %76 = vector.broadcast %75 : vector<1x32xf32> to vector<16x32xf32>
    %77 = arith.addf %74, %76 : vector<16x32xf32>
    %c0_32 = arith.constant 0 : index
    %c0_33 = arith.constant 0 : index
    %c0_34 = arith.constant 0 : index
    %78 = vector.load %arg7[%c0_32, %c0_33, %c0_34] : memref<1x16x32xf32, #tpu.memory_space<vmem>>, vector<1x16x32xf32>
    %79 = vector.shape_cast %78 : vector<1x16x32xf32> to vector<16x32xf32>
    %80 = vector.shape_cast %77 : vector<16x32xf32> to vector<1x16x32xf32>
    tpu.vector_store %arg7[%c0_32, %c0_33, %c0_34], %80 {strides = array<i32>} : memref<1x16x32xf32, #tpu.memory_space<vmem>>, vector<1x16x32xf32>,
    return
  }
  func.func @transform_0(%arg0: i32) -> (i32, i32, i32) {
    %c0_i32 = arith.constant 0 : i32
    %c0_i32_0 = arith.constant 0 : i32
    %c0_i32_1 = arith.constant 0 : i32
    return %arg0, %c0_i32, %c0_i32_0 : i32, i32, i32
  }
  func.func @transform_1(%arg0: i32) -> (i32, i32, i32) {
    %c0_i32 = arith.constant 0 : i32
    %c0_i32_0 = arith.constant 0 : i32
    %c0_i32_1 = arith.constant 0 : i32
    return %arg0, %c0_i32, %c0_i32_0 : i32, i32, i32
  }
  func.func @transform_2(%arg0: i32) -> (i32, i32) {
    %c0_i32 = arith.constant 0 : i32
    %c0_i32_0 = arith.constant 0 : i32
    %c0_i32_1 = arith.constant 0 : i32
    return %c0_i32, %c0_i32_0 : i32, i32
  }
  func.func @transform_3(%arg0: i32) -> (i32, i32) {
    %c0_i32 = arith.constant 0 : i32
    %c0_i32_0 = arith.constant 0 : i32
    %c0_i32_1 = arith.constant 0 : i32
    return %c0_i32, %c0_i32_0 : i32, i32
  }
  func.func @transform_4(%arg0: i32) -> (i32, i32) {
    %c0_i32 = arith.constant 0 : i32
    %c0_i32_0 = arith.constant 0 : i32
    %c0_i32_1 = arith.constant 0 : i32
    return %c0_i32, %c0_i32_0 : i32, i32
  }
  func.func @transform_5(%arg0: i32) -> (i32, i32) {
    %c0_i32 = arith.constant 0 : i32
    %c0_i32_0 = arith.constant 0 : i32
    %c0_i32_1 = arith.constant 0 : i32
    return %c0_i32, %c0_i32_0 : i32, i32
  }
  func.func @transform_6(%arg0: i32) -> (i32, i32, i32) {
    %c0_i32 = arith.constant 0 : i32
    %c0_i32_0 = arith.constant 0 : i32
    %c0_i32_1 = arith.constant 0 : i32
    return %arg0, %c0_i32, %c0_i32_0 : i32, i32, i32
  }
}

</mosaic_0001>

<bundles_post_ra>
// kernel: tpu_custom_call.1
= control target key start
LH: loop header
LB: loop body
LE: loop exit
PB: predicated region body
PF: predicated region fallthrough
CT: control target
= control target key end

     0   :  { %s2540_s0 = inlined_call_operand.hbm [shape: f32[2,16,32], index: 0, kind: input, shape index: {}]   ;;  %s2541_s1 = inlined_call_operand.hbm [shape: f32[2,8,32], index: 1, kind: input, shape index: {}]   ;;  %s2542_s2 = inlined_call_operand.hbm [shape: f32[32,32], index: 2, kind: input, shape index: {}]   ;;  %s2543_s3 = inlined_call_operand.hbm [shape: f32[32,64], index: 3, kind: input, shape index: {}]   ;;  %s2544_s4 = inlined_call_operand.hbm [shape: f32[32,32], index: 4, kind: input, shape index: {}]   ;;  %s2545_s5 = inlined_call_operand.vmem [shape: f32[1,32], index: 5, kind: input, shape index: {}]   ;;  %s2546_s6 = inlined_call_operand.hbm [shape: f32[2,16,32], index: 6, kind: output, shape index: {}]  }
   0x1   :  { %2552 = sst [smem:[#allocation17_spill]] %s2540_s0 }
   0x2   :  { %2553 = sst [smem:[#allocation18_spill]] %s2542_s2 }
   0x3   :  { %2554 = sst [smem:[#allocation19_spill]] %s2543_s3 }
   0x4   :  { %2555 = sst [smem:[#allocation20_spill]] %s2544_s4 }
   0x5   :  { %11 = vsyncpa [#allocation3], 0 }
   0x6   :  { %13 = vsyncpa [#allocation3 + $0x1], 0 }
   0x7   :  { %14 = vsyncpa [#allocation6], 0 }
   0x8   :  { %16 = vsyncpa [#allocation6 + $0x1], 0 }
   0x9   :  { %17 = vsyncpa [#allocation9], 0 }
   0xa   :  { %18 = vsyncpa [#allocation4], 0 }
   0xb   :  { %20 = vsyncpa [#allocation4 + $0x1], 0  ;;  %s2150_s21 = smov 0   ;;  %s2152_s22 = smov 0  }
   0xc   :  { %s2154_s23 = smov 0   ;;  %s2156_s24 = smov 0  }
   0xd LB: > { %s2171_s25 = sadd.s32 4294967295, %s2091_s24   ;;  %s1552_s26 = sadd.s32 4294967294, %s2091_s24   ;;  %s2091_s24 = sphi %s2156_s24, %s2582_s24   ;;  %s2087_s23 = sphi %s2154_s23, %s2581_s23   ;;  %s2083_s22 = sphi %s2152_s22, %s2580_s22   ;;  %s2079_s21 = sphi %s2150_s21, %s2579_s21  }
   0xe   : > { %p46_p0 = scmp.ne.s32.totalorder %s2083_s22, %s2079_s21  ;;  %p2547_p1 = scmp.eq.s32.totalorder %s2171_s25, 0 }
   0xf   : > { %p186_p3 = scmp.eq.s32.totalorder %s1552_s26, 1  ;;  %p1553_p5 = scmp.ge.s32.totalorder %s2091_s24, 1 }
  0x10   : > { %p2180_p4 = por %p2547_p1, %p46_p0  ;;  %p193_p7 = scmp.lt.s32.totalorder %s2091_s24, 3 }
  0x11   : > { %p2185_p6 = por %p186_p3, %p46_p0  ;;  %s2093_s30 = smov [#allocation7]  }
  0x12   : > { %s2556_s27 = scalar_select %p2180_p4, 1, 0 }
  0x13   : > { %s2557_s28 = scalar_select %p2185_p6, 1, 0 }
  0x14   : > { %p2190_p8 = pnand %p1553_p5, %p193_p7  ;;  %s205_s7 = sshll.u32 %s2093_s30, 4  ;;  %s2194_s7 = int_to_ptr.vmem [resolvable:$true] %s205_s7 }
  0x15   : > { %s2094_s9 = smov [#allocation8]   ;;  %s2095_s11 = smov [#allocation10]  }
  0x16   : > { %s2558_s29 = scalar_select %p2190_p8, 1, 0 }
  0x17   : > { %p1757_p9 = pneg %p2190_p8  ;;  %s218_s10 = sshll.u32 %s2094_s9, 4  ;;  %s2205_s10 = int_to_ptr.vmem [resolvable:$true] %s218_s10 }
  0x18   : > { %s2207_s12 = sshll.u32 %s2095_s11, 4  ;;  %s2560_s2 = sld [smem:[#allocation18_spill]]  ;;  %s232_s12 = int_to_ptr.vmem [resolvable:$true] %s2207_s12 }
  0x19   : > { %p2201_p11 = pnand %p1757_p9, %p2547_p1 }
  0x1b   : > { %p2217_p13 = pneg %p2201_p11 }
  0x1e   : > { %s1869_s15 = scalar_lea.hbm %s2560_s2, 512 }
  0x1f   : > { %p1870_p12 = scmp.ne.s32.totalorder %s2560_s2, %s1869_s15  ;;  %p1876_p5 = scmp.lt.u32.totalorder %s1869_s15, %s2560_s2 }
  0x21   : > { %p1872_p0 = pnand %p2217_p13, %p1870_p12 }
  0x23   : > { %p1873_p3 = pneg %p1872_p0 }
  0x25   : > { %p1878_p7 = pnand %p1876_p5, %p1873_p3 }
  0x27   : > { %1881 = shalt.err (!%p1878_p7)
}
  0x28   : > { %s1882_s26 = scalar_lea.vmem %s2194_s7, 512  ;;  %p1890_p2 = scmp.lt.s32.totalorder %s2194_s7, %s2194_s7 }
  0x29   : > { %p1883_p9 = scmp.ne.s32.totalorder %s2194_s7, %s1882_s26  ;;  %p1891_p6 = scmp.lt.s32.totalorder %s1882_s26, %s1882_s26 }
  0x2b   : > { %p1885_p10 = pnand %p1883_p9, %p2217_p13  ;;  %p1892_p12 = por %p1891_p6, %p1890_p2 }
  0x2d   : > { %p1886_p1 = pneg %p1885_p10 }
  0x2f   : > { %p1893_p0 = pnand %p1892_p12, %p1886_p1 }
  0x31   : > { %1896 = shalt.err (!%p1893_p0)
}
  0x32   : > { %s2550_s30 = smov 128   ;;  %s2097_s9 = smov 8  }
  0x33   : > { %1760 = dma.hbm_to_vmem [thread:$0]  (!%p2201_p11), %s2560_s2, 512, %s2194_s7, [#allocation6], %s2550_s30, %s2550_s30, %s2097_s9  }
  0x34   : > { %s2562_s3 = sld [smem:[#allocation19_spill]] }
  0x3a   : > { %s1897_s16 = scalar_lea.hbm %s2562_s3, 512 }
  0x3b   : > { %p1898_p1 = scmp.ne.s32.totalorder %s2562_s3, %s1897_s16  ;;  %p1904_p10 = scmp.lt.u32.totalorder %s1897_s16, %s2562_s3 }
  0x3d   : > { %p1900_p2 = pnand %p1898_p1, %p2217_p13 }
  0x3f   : > { %p1901_p6 = pneg %p1900_p2 }
  0x41   : > { %p1906_p3 = pnand %p1904_p10, %p1901_p6 }
  0x43   : > { %1909 = shalt.err (!%p1906_p3)
}
  0x44   : > { %s1910_s7 = scalar_lea.vmem %s2205_s10, 512  ;;  %p1918_p12 = scmp.lt.s32.totalorder %s2205_s10, %s2205_s10 }
  0x45   : > { %p1911_p5 = scmp.ne.s32.totalorder %s2205_s10, %s1910_s7  ;;  %p1919_p0 = scmp.lt.s32.totalorder %s1910_s7, %s1910_s7 }
  0x47   : > { %p1913_p7 = pnand %p1911_p5, %p2217_p13  ;;  %p1920_p1 = por %p1919_p0, %p1918_p12 }
  0x49   : > { %p1914_p9 = pneg %p1913_p7 }
  0x4b   : > { %p1921_p2 = pnand %p1920_p1, %p1914_p9 }
  0x4d   : > { %1924 = shalt.err (!%p1921_p2)
}
  0x4e   : > { %1763 = dma.hbm_to_vmem [thread:$0]  (!%p2201_p11), %s2562_s3, 512, %s2205_s10, [#allocation9], %s2550_s30, %s2550_s30, %s2097_s9  }
  0x4f   : > { %s2563_s4 = sld [smem:[#allocation20_spill]] }
  0x55   : > { %s1925_s16 = scalar_lea.hbm %s2563_s4, 512 }
  0x56   : > { %p1926_p6 = scmp.ne.s32.totalorder %s2563_s4, %s1925_s16  ;;  %p1932_p5 = scmp.lt.u32.totalorder %s1925_s16, %s2563_s4 }
  0x58   : > { %p1928_p10 = pnand %p1926_p6, %p2217_p13 }
  0x5a   : > { %p1929_p3 = pneg %p1928_p10 }
  0x5c   : > { %p1934_p7 = pnand %p1932_p5, %p1929_p3 }
  0x5e   : > { %1937 = shalt.err (!%p1934_p7)
}
  0x5f   : > { %s1938_s7 = scalar_lea.vmem %s232_s12, 512  ;;  %p1946_p1 = scmp.lt.s32.totalorder %s232_s12, %s232_s12 }
  0x60   : > { %p1939_p9 = scmp.ne.s32.totalorder %s232_s12, %s1938_s7  ;;  %p1947_p2 = scmp.lt.s32.totalorder %s1938_s7, %s1938_s7 }
  0x62   : > { %p1941_p12 = pnand %p1939_p9, %p2217_p13  ;;  %p1948_p4 = por %p1947_p2, %p1946_p1 }
  0x64   : > { %p1942_p0 = pneg %p1941_p12 }
  0x66   : > { %p1949_p8 = pnand %p1948_p4, %p1942_p0 }
  0x68   : > { %1952 = shalt.err (!%p1949_p8)
}
  0x69   : > { %1766 = dma.hbm_to_vmem [thread:$0]  (!%p2201_p11), %s2563_s4, 512, %s232_s12, [#allocation9], %s2550_s30, %s2550_s30, %s2097_s9  }
  0x6a   : > { %s2290_s18 = sadd.s32 1, %s2091_s24   ;;  %s33_s13 = sadd.s32 1, %s2087_s23 }
  0x6b   : > { %s30_s8 = ssub.s32 %s2091_s24, %s2290_s18  ;;  %p40_p8 = scmp.ne.s32.totalorder %s2087_s23, %s2083_s22 }
  0x6c   : > { %p31_p4 = scmp.eq.s32.totalorder %s30_s8, 0  ;;  %p41_p13 = scmp.eq.s32.totalorder %s2091_s24, 0 }
  0x6d   : > { %p1781_p6 = scmp.lt.s32.totalorder %s2091_s24, 2  ;;  %p2564_p3 = scmp.eq.s32.totalorder %s2171_s25, 1 }
  0x6e   : > { %s2300_s14 = scalar_select %p31_p4, %s2087_s23, %s33_s13  }
  0x6f   : > { %p42_p10 = por %p41_p13, %p40_p8  ;;  %p2304_p5 = por %p2564_p3, %p40_p8 }
  0x70   : > { %s2309_s16 = sand.u32 1, %s2087_s23   ;;  %s1601_s12 = sshll.u32 %s2091_s24, 8 }
  0x71   : > { %s2565_s15 = scalar_select %p2304_p5, 1, 0 }
  0x72   : > { %s1558_s17 = sshll.u32 %s2309_s16, 4  ;;  %s2566_s0 = sld [smem:[#allocation17_spill]] }
  0x73   : > { %s252_s7 = scalar_lea.vmem [#allocation2], %s1558_s17  ;;  %p2318_p11 = pnand %p1781_p6, %p42_p10 }
  0x74   : > { %s259_s10 = sshll.u32 %s252_s7, 4  ;;  %s249_s13 = scalar_lea.sflag [#allocation3], %s2309_s16  ;;  %s2322_s10 = int_to_ptr.vmem [resolvable:$true] %s259_s10 }
  0x75   : > { %p1955_p9 = pneg %p2318_p11 }
  0x78   : > { %s2316_s26 = scalar_lea.hbm %s2566_s0, %s1601_s12  ;;  %s1958_s19 = scalar_lea.hbm %s2566_s0, 512 }
  0x79   : > { %s1953_s30 = scalar_lea.hbm %s2316_s26, 256  ;;  %p1959_p1 = scmp.lt.u32.totalorder %s2316_s26, %s2566_s0 }
  0x7a   : > { %p1954_p7 = scmp.ne.s32.totalorder %s2316_s26, %s1953_s30  ;;  %p1960_p2 = scmp.lt.u32.totalorder %s1958_s19, %s1953_s30 }
  0x7b   : > { %p1962_p8 = scmp.lt.u32.totalorder %s1953_s30, %s2316_s26 }
  0x7c   : > { %p1956_p12 = pnand %p1955_p9, %p1954_p7  ;;  %p1961_p4 = por %p1960_p2, %p1959_p1 }
  0x7e   : > { %p1957_p0 = pneg %p1956_p12  ;;  %p1963_p13 = por %p1962_p8, %p1961_p4 }
  0x80   : > { %p1964_p6 = pnand %p1963_p13, %p1957_p0 }
  0x82   : > { %1967 = shalt.err (!%p1964_p6)
}
  0x83   : > { %s1968_s8 = scalar_lea.vmem %s2322_s10, 256  ;;  %s2098_s12 = smov [#allocation2]  }
  0x84   : > { %p1969_p10 = scmp.ne.s32.totalorder %s2322_s10, %s1968_s8  ;;  %s1973_s17 = sshll.u32 %s2098_s12, 4  ;;  %s1974_s17 = int_to_ptr.vmem [resolvable:$false] %s1973_s17 }
  0x85   : > { %s1975_s20 = scalar_lea.vmem %s1974_s17, 512  ;;  %p1976_p12 = scmp.lt.s32.totalorder %s2322_s10, %s1974_s17 }
  0x86   : > { %p1971_p3 = pnand %p1969_p10, %p1955_p9  ;;  %p1977_p1 = scmp.lt.s32.totalorder %s1975_s20, %s1968_s8 }
  0x88   : > { %p1972_p7 = pneg %p1971_p3  ;;  %p1978_p2 = por %p1977_p1, %p1976_p12 }
  0x8a   : > { %p1979_p4 = pnand %p1978_p2, %p1972_p7 }
  0x8c   : > { %1982 = shalt.err (!%p1979_p4)
}
  0x8d   : > { %s2568_s30 = smov 128   ;;  %s1561_s19 = sshll.u32 %s2309_s16, 3 }
  0x8e   : > { %1770 = dma.hbm_to_vmem [thread:$0]  (!%p2318_p11), %s2316_s26, 256, %s2322_s10, %s249_s13, %s2568_s30, %s2568_s30, %s2097_s9  }
  0x8f   : > { %s1562_s7 = sshll.u32 %s2091_s24, 7  ;;  %s273_s20 = scalar_lea.vmem [#allocation5], %s1561_s19 }
  0x90   : > { %s2361_s17 = scalar_lea.hbm %s2541_s1, %s1562_s7  ;;  %s280_s0 = sshll.u32 %s273_s20, 4  ;;  %s281_s0 = int_to_ptr.vmem [resolvable:$true] %s280_s0 }
  0x91   : > { %s2569_s2 = sand.u32 1, %s2091_s24   ;;  %s1983_s4 = scalar_lea.hbm %s2361_s17, 128 }
  0x92   : > { %s270_s3 = scalar_lea.sflag [#allocation6], %s2569_s2  ;;  %p1984_p0 = scmp.ne.s32.totalorder %s2361_s17, %s1983_s4 }
  0x93   : > { %s1988_s26 = scalar_lea.hbm %s2541_s1, 256  ;;  %p1989_p6 = scmp.lt.u32.totalorder %s2361_s17, %s2541_s1 }
  0x94   : > { %p1986_p8 = pnand %p1984_p0, %p1955_p9  ;;  %p1990_p10 = scmp.lt.u32.totalorder %s1988_s26, %s1983_s4 }
  0x95   : > { %p1992_p7 = scmp.lt.u32.totalorder %s1983_s4, %s2361_s17 }
  0x96   : > { %p1987_p13 = pneg %p1986_p8  ;;  %p1991_p3 = por %p1990_p10, %p1989_p6 }
  0x98   : > { %p1993_p12 = por %p1992_p7, %p1991_p3 }
  0x9a   : > { %p1994_p1 = pnand %p1993_p12, %p1987_p13 }
  0x9c   : > { %1997 = shalt.err (!%p1994_p1)
}
  0x9d   : > { %s1998_s2 = scalar_lea.vmem %s281_s0, 128  ;;  %s2099_s30 = smov [#allocation5]  }
  0x9e   : > { %p1999_p2 = scmp.ne.s32.totalorder %s281_s0, %s1998_s2  ;;  %s2003_s19 = sshll.u32 %s2099_s30, 4  ;;  %s2004_s19 = int_to_ptr.vmem [resolvable:$false] %s2003_s19 }
  0x9f   : > { %s2005_s7 = scalar_lea.vmem %s2004_s19, 256  ;;  %p2006_p8 = scmp.lt.s32.totalorder %s281_s0, %s2004_s19 }
  0xa0   : > { %p2001_p4 = pnand %p1999_p2, %p1955_p9  ;;  %p2007_p5 = scmp.lt.s32.totalorder %s2005_s7, %s1998_s2 }
  0xa2   : > { %p2002_p0 = pneg %p2001_p4  ;;  %p2008_p6 = por %p2007_p5, %p2006_p8 }
  0xa4   : > { %p2009_p10 = pnand %p2008_p6, %p2002_p0 }
  0xa6   : > { %2012 = shalt.err (!%p2009_p10)
}
  0xa7   : > { %1773 = dma.hbm_to_vmem [thread:$0]  (!%p2318_p11), %s2361_s17, 128, %s281_s0, %s270_s3  }
  0xa8   : > { %p2570_p13 = scmp.ne.s32.totalorder %s2558_s29, 0 }
  0xa9   : > { %s2387_s4 = sand.u32 (!%p2570_p13), 1, %s2083_s22   ;;  %p2571_p5 = scmp.ne.s32.totalorder (!%p2570_p13), %s2556_s27, 0 }
  0xaa   : > { %289 = sbr.rel (%p2570_p13) target bundleno = 1630 (0x65e), region = 44  ;;  %s1564_s8 = sshll.u32 (!%p2570_p13), %s2387_s4, 4 }
  0xab   : > { %s292_s12 = scalar_lea.sflag (!%p2570_p13), [#allocation3], %s2387_s4  ;;  %s2393_s20 = scalar_lea.vmem (!%p2570_p13), [#allocation2], %s1564_s8 }
  0xb1   : > { %2058 = dma.done.wait (%p2571_p5), %s292_s12, 256  }
  0xb2   : > { %2060 = vsyncadd (%p2571_p5), %s292_s12, 4294967040  ;;  %s300_s0 = sand.u32 1, %s2171_s25   ;;  %s1565_s3 = sshll.u32 %s2387_s4, 3 }
  0xb3   : > { %s301_s29 = scalar_lea.sflag [#allocation6], %s300_s0  ;;  %s2401_s11 = scalar_lea.vmem [#allocation5], %s1565_s3 }
  0xb4   : > { %2062 = dma.done.wait (%p2571_p5), %s301_s29, 128  }
  0xb5   : > { %2064 = vsyncadd (%p2571_p5), %s301_s29, 4294967168  ;;  %p2572_p11 = scmp.eq.s32.totalorder %s2171_s25, 0 }
  0xb7   : > { %2066 = dma.done.wait (%p2572_p11), [#allocation6], 512   ;;  %p2573_p9 = pmov %p2572_p11 }
  0xb9   : > { %2068 = vsyncadd (%p2573_p9), [#allocation6], 4294966784  ;;  %p2574_p3 = pmov %p2573_p9 }
  0xbb   : > { %2070 = dma.done.wait (%p2574_p3), [#allocation9], 1024   ;;  %p2575_p7 = pmov %p2574_p3 }
  0xbc   : > { %v2100_v0 = vmov 0.0|0.0   ;;  %vm2101_vm0 = vmmov 0   ;;  %v2102_v1 = vmov 0.0   ;;  %v353_v2 = vld [vmem:[#allocation7] sm:$0xff]  ;;  %v354_v3 = vld [vmem:[#allocation7 + $0x8] sm:$0xff]  ;;  %vm357_vm1 = vcmask 261120  }
  0xbd   : > { %2072 = vsyncadd (%p2575_p7), [#allocation9], 4294966272  ;;  %1725 = vmatprep.subr.bf16.mxu1 %v2100_v0  ;;  %1663 = vmatprep.mubr.msk.f32.mxu1 %vm2101_vm0, %v2102_v1  ;;  %v439_v4 = vld [vmem:[#allocation8] sm:$0xff]  ;;  %v1717_v5 = vpack.c.bf16 %v354_v3, %v353_v2  ;;  %v440_v6 = vld [vmem:[#allocation8 + $0x8] sm:$0xff]  ;;  %vm518_vm2 = vcmask 64512   ;;  %s2103_s27 = smov 112  }
  0xbe   : > { %v355_v7 = vld [vmem:[#allocation7 + $0x10] sm:$0xff]  ;;  %v356_v8 = vld [vmem:[#allocation7 + $0x18] sm:$0xff]  ;;  %v1726_v9 = vpack.c.bf16 %v440_v6, %v439_v4  ;;  %s2104_s17 = smov 120   ;;  %s2105_s9 = smov 104   ;;  %vm1314_vm3 = vcmask 130048   ;;  %vm1317_vm4 = vcmask 195584  }
  0xbf   : > { %v1721_v10 = vpack.c.bf16 %v356_v8, %v355_v7  ;;  %v441_v11 = vld [vmem:[#allocation8 + $0x10] sm:$0xff]  ;;  %v442_v12 = vld [vmem:[#allocation8 + $0x18] sm:$0xff]  ;;  %1718 = vmatprep.subr.bf16.mxu0 %v1717_v5  ;;  %s2106_s16 = smov 88   ;;  %s2107_s26 = smov 96  }
  0xc0   : > { %v350_v13 = vld [vmem:[%s2393_s20] sm:$0xff]  ;;  %1727 = vmatpush3.bf16.msra.mxu1 %v1726_v9  ;;  %1720 = vmatpush3.bf16.msra.mxu0 %v1717_v5  ;;  %v1729_v14 = vpack.c.bf16 %v442_v12, %v441_v11  ;;  %v351_v16 = vld [vmem:[%s2393_s20 + $0x8] sm:$0xff]  ;;  %s2108_s10 = smov 80   ;;  %s2109_s13 = smov 72  }
  0xc1   : > { %1652 = vmatprep.mubr.msk.f32.mxu0 %vm357_vm1, %v350_v13  ;;  %1728 = vmatprep.subr.bf16.mxu1 %v2100_v0  ;;  %v352_v15 = vld [vmem:[%s2401_s11] sm:$0xff]  ;;  %s2110_s2 = smov 8   ;;  %s2111_s30 = smov 16  }
  0xc2   : > { %1722 = vmatprep.subr.bf16.mxu0 %v1721_v10  ;;  %s2112_s19 = smov 24   ;;  %s349_s20 = scalar_lea.vmem [#allocation11], %s1564_s8 }
  0xc3   : > { %s1428_s0 = sshll.u32 %s349_s20, 4  ;;  %s1602_s3 = sshll.u32 %s2171_s25, 8  ;;  %s2488_s0 = int_to_ptr.vmem [resolvable:$true] %s1428_s0 }
  0xc4   : > { %1730 = vmatpush3.bf16.msra.mxu1 %v1729_v14  ;;  %1724 = vmatpush3.bf16.msra.mxu0 %v1721_v10  ;;  %s1415_s8 = scalar_lea.sflag [#allocation4], %s2387_s4  ;;  %s2013_s25 = scalar_lea.vmem %s2488_s0, 256 }
  0xc5   : > { %p2014_p12 = scmp.ne.s32.totalorder %s2488_s0, %s2013_s25  ;;  %p2576_p1 = scmp.ne.s32.totalorder %s2565_s15, 0 }
  0xc7   : > { %1664 = vmatmul.mubr.msk.f32.vlgmr.msra.gmra.mrb[0].mxu1 %vm357_vm1, %v352_v15  ;;  %1653 = vmatmul.mubr.msk.f32.vlgmr.msra.gmra.mrb[0].mxu0 %vm357_vm1, %v351_v16  ;;  %p2015_p2 = pnand %p2014_p12, %p2576_p1 }
  0xc9   : > { %p2016_p4 = pneg %p2015_p2 }
 0x19a   : > { %v2421_v17 = vpop.f32.mrb[0].mxu1  ;;  %v1654_v18 = vpop.f32.mrb[0].mxu0 }
 0x19b   : > { %906 = vrot.lane.b32.xlu1 %v2421_v17, %s2103_s27  ;;  %713 = vrot.lane.b32.xlu0 %v2421_v17, %s2104_s17  ;;  %v517_v19 = vmul.f32 0.35355338, %v1654_v18  ;;  %v1665_v20 = vpop.f32.mrb[1].mxu1  ;;  %v430_v21 = vpop.f32.mrb[1].mxu0 }
 0x19c   : > { %1666 = vmatprep.subr.msk.mxu1 %vm518_vm2, %v2421_v17  ;;  %v516_v22 = vmul.f32 0.35355338, %v430_v21 }
 0x19d   : > { %1667 = vmatpush3.xpose.msk.msra.mxu1 %vm518_vm2, %v2421_v17 }
 0x19e   : > { %1668 = vmatprep.mubr.msk.f32.mxu1 %vm518_vm2, %v516_v22 }
 0x19f   : > { %711 = vrot.lane.b32.xlu1 %v517_v19, %s2104_s17  ;;  %709 = vrot.lane.b32.xlu0 %v516_v22, %s2104_s17  ;;  %s2113_s17 = smov [#allocation11]  }
 0x1a0   : > { %1669 = vmatmul.mubr.msk.f32.vlgmr.msra.gmra.mrb[2].mxu1 %vm518_vm2, %v517_v19 }
 0x1a3   : > { %904 = vrot.lane.b32.xlu1 %v517_v19, %s2103_s27  ;;  %902 = vrot.lane.b32.xlu0 %v516_v22, %s2103_s27  ;;  %s2493_s27 = scalar_lea.hbm %s2546_s6, %s1602_s3 }
 0x1a7   : > { %1095 = vrot.lane.b32.xlu1 %v516_v22, %s2105_s9  ;;  %1099 = vrot.lane.b32.xlu0 %v2421_v17, %s2105_s9 }
 0x1ab   : > { %1097 = vrot.lane.b32.xlu0 %v517_v19, %s2105_s9  ;;  %s2017_s9 = sshll.u32 %s2113_s17, 4  ;;  %s2018_s9 = int_to_ptr.vmem [resolvable:$false] %s2017_s9 }
 0x1ac   : > { %p2020_p0 = scmp.lt.s32.totalorder %s2488_s0, %s2018_s9 }
 0x20d   : > { %v907_v23 = vpop.permute.xlu1 %906  ;;  %v714_v24 = vpop.permute.xlu0 %713 }
 0x20e   : > { %1676 = vmatprep.subr.msk.mxu0 %vm518_vm2, %v714_v24 }
 0x20f   : > { %1677 = vmatpush3.xpose.msk.msra.mxu0 %vm518_vm2, %v714_v24 }
 0x210   : > { %1686 = vmatprep.subr.msk.mxu0 %vm518_vm2, %v907_v23 }
 0x211   : > { %v712_v25 = vpop.permute.xlu1 %711  ;;  %v710_v26 = vpop.permute.xlu0 %709 }
 0x212   : > { %1678 = vmatprep.mubr.msk.f32.mxu0 %vm518_vm2, %v710_v26 }
 0x213   : > { %1679 = vmatmul.mubr.msk.f32.vlgmr.msra.gmra.mrb[2].mxu0 %vm518_vm2, %v712_v25 }
 0x214   : > { %1687 = vmatpush3.xpose.msk.msra.mxu0 %vm518_vm2, %v907_v23 }
 0x215   : > { %v905_v27 = vpop.permute.xlu1 %904  ;;  %v903_v28 = vpop.permute.xlu0 %902 }
 0x216   : > { %1688 = vmatprep.mubr.msk.f32.mxu0 %vm518_vm2, %v903_v28 }
 0x217   : > { %1689 = vmatmul.mubr.msk.f32.vlgmr.msra.gmra.mrb[4].mxu0 %vm518_vm2, %v905_v27 }
 0x219   : > { %v1096_v29 = vpop.permute.xlu1 %1095  ;;  %v1100_v30 = vpop.permute.xlu0 %1099 }
 0x21a   : > { %1696 = vmatprep.subr.msk.mxu0 %vm518_vm2, %v1100_v30  ;;  %1698 = vmatprep.mubr.msk.f32.mxu0 %vm518_vm2, %v1096_v29 }
 0x21b   : > { %1697 = vmatpush3.xpose.msk.msra.mxu0 %vm518_vm2, %v1100_v30 }
 0x21d   : > { %v1098_v31 = vpop.permute.xlu0 %1097 }
 0x21e   : > { %1699 = vmatmul.mubr.msk.f32.vlgmr.msra.gmra.mrb[6].mxu0 %vm518_vm2, %v1098_v31 }
 0x273   : > { %v1670_v32 = vpop.f32.mrb[2].mxu1 }
 0x274   : > { %v594_v33 = vpop.f32.mrb[3].mxu1  ;;  %v606_v34 = vsel %vm518_vm2, %v1670_v32, -inf }
 0x275   : > { %607 = vmax.xlane.f32.xlu0 %v606_v34  ;;  %v603_v35 = vsel %vm518_vm2, %v594_v33, -inf }
 0x276   : > { %604 = vmax.xlane.f32.xlu1 %v603_v35 }
 0x2e6   : > { %v1680_v36 = vpop.f32.mrb[2].mxu0 }
 0x2e7   : > { %v787_v37 = vpop.f32.mrb[3].mxu0  ;;  %v799_v38 = vsel %vm518_vm2, %v1680_v36, -inf }
 0x2e8   : > { %800 = vmax.xlane.f32.xlu1 %v799_v38  ;;  %v796_v39 = vsel %vm518_vm2, %v787_v37, -inf }
 0x2e9   : > { %797 = vmax.xlane.f32.xlu0 %v796_v39 }
 0x2ea   : > { %v1690_v40 = vpop.f32.mrb[4].mxu0 }
 0x2eb   : > { %v980_v41 = vpop.f32.mrb[5].mxu0  ;;  %v992_v42 = vsel %vm518_vm2, %v1690_v40, -inf }
 0x2ec   : > { %993 = vmax.xlane.f32.xlu1 %v992_v42  ;;  %v989_v43 = vsel %vm518_vm2, %v980_v41, -inf }
 0x2ed   : > { %990 = vmax.xlane.f32.xlu0 %v989_v43 }
 0x2f1   : > { %v1700_v44 = vpop.f32.mrb[6].mxu0 }
 0x2f2   : > { %v1173_v45 = vpop.f32.mrb[7].mxu0  ;;  %v1185_v46 = vsel %vm518_vm2, %v1700_v44, -inf }
 0x2f3   : > { %1186 = vmax.xlane.f32.xlu1 %v1185_v46  ;;  %v1182_v47 = vsel %vm518_vm2, %v1173_v45, -inf }
 0x2f4   : > { %1183 = vmax.xlane.f32.xlu0 %v1182_v47 }
 0x302   : > { %v608_v48 = vpop.xlane.xlu0 %607 }
 0x303   : > { %v605_v49 = vpop.xlane.xlu1 %604  ;;  %v610_v50 = vsub.f32 %v1670_v32, %v608_v48 }
 0x304   : > { %818 = vrot.lane.b32.xlu1 %v2421_v17, %s2106_s16  ;;  %v609_v51 = vsub.f32 %v594_v33, %v605_v49  ;;  %s2019_s16 = scalar_lea.vmem %s2018_s9, 512 }
 0x305   : > { %v613_v52 = vmul.f32 1.442695, %v610_v50  ;;  %p2021_p8 = scmp.lt.s32.totalorder %s2019_s16, %s2013_s25 }
 0x306   : > { %v611_v53 = vmul.f32 1.442695, %v609_v51 }
 0x307   : > { %1837 = vpow2.f32 %v613_v52  ;;  %p2022_p6 = por %p2021_p8, %p2020_p0 }
 0x308   : > { %1839 = vpow2.f32 %v611_v53 }
 0x309   : > { %p2023_p10 = pnand %p2022_p6, %p2016_p4 }
 0x30a   : > { %625 = vrot.lane.b32.xlu0 %v2421_v17, %s2107_s26 }
 0x311   : > { %v2454_v54 = vpop.eup %1837 }
 0x312   : > { %v1840_v55 = vpop.eup %1839  ;;  %v618_v56 = vsel %vm518_vm2, %v2454_v54, 0.0 }
 0x313   : > { %v615_v57 = vsel %vm518_vm2, %v1840_v55, 0.0 }
 0x328   : > { %619 = vadd.xlane.f32.xlu1 %v618_v56 }
 0x329   : > { %616 = vadd.xlane.f32.xlu0 %v615_v57  ;;  %v1322_v57 = vld [vmem:[#allocation10 + $0x10] sm:$0xff] }
 0x375   : > { %v801_v58 = vpop.xlane.xlu1 %800 }
 0x376   : > { %v803_v59 = vsub.f32 %v1680_v36, %v801_v58  ;;  %v798_v60 = vpop.xlane.xlu0 %797  ;;  %v1323_v58 = vld [vmem:[#allocation10 + $0x18] sm:$0xff] }
 0x377   : > { %v802_v61 = vsub.f32 %v787_v37, %v798_v60 }
 0x378   : > { %v806_v62 = vmul.f32 1.442695, %v803_v59  ;;  %v1735_v59 = vpack.c.bf16 %v1323_v58, %v1322_v57 }
 0x379   : > { %v804_v63 = vmul.f32 1.442695, %v802_v61  ;;  %v994_v0 = vpop.xlane.xlu1 %993 }
 0x37a   : > { %1841 = vpow2.f32 %v806_v62  ;;  %v996_v1 = vsub.f32 %v1690_v40, %v994_v0  ;;  %v991_v2 = vpop.xlane.xlu0 %990 }
 0x37b   : > { %1843 = vpow2.f32 %v804_v63  ;;  %v995_v3 = vsub.f32 %v980_v41, %v991_v2 }
 0x37c   : > { %v999_v4 = vmul.f32 1.442695, %v996_v1 }
 0x37d   : > { %v997_v5 = vmul.f32 1.442695, %v995_v3 }
 0x37e   : > { %1845 = vpow2.f32 %v999_v4 }
 0x37f   : > { %1847 = vpow2.f32 %v997_v5 }
 0x380   : > { %v1187_v6 = vpop.xlane.xlu1 %1186 }
 0x381   : > { %v1189_v7 = vsub.f32 %v1700_v44, %v1187_v6  ;;  %v1184_v8 = vpop.xlane.xlu0 %1183 }
 0x382   : > { %v1188_v9 = vsub.f32 %v1173_v45, %v1184_v8 }
 0x383   : > { %v1192_v10 = vmul.f32 1.442695, %v1189_v7 }
 0x384   : > { %v1842_v11 = vpop.eup %1841  ;;  %v1190_v12 = vmul.f32 1.442695, %v1188_v9  ;;  %v819_v18 = vpop.permute.xlu1 %818 }
 0x385   : > { %v1844_v13 = vpop.eup %1843  ;;  %1849 = vpow2.f32 %v1192_v10  ;;  %v626_v14 = vpop.permute.xlu0 %625  ;;  %v811_v15 = vsel %vm518_vm2, %v1842_v11, 0.0 }
 0x386   : > { %1851 = vpow2.f32 %v1190_v12  ;;  %1671 = vmatprep.subr.mxu1 %v626_v14  ;;  %812 = vadd.xlane.f32.xlu1 %v811_v15  ;;  %v808_v16 = vsel %vm518_vm2, %v1844_v13, 0.0 }
 0x387   : > { %1672 = vmatpush3.msra.mxu1 %v626_v14  ;;  %809 = vadd.xlane.f32.xlu0 %v808_v16  ;;  %v1593_v14 = vld [vmem:[%s2545_s5] ss:$0 sm:$0xff] }
 0x388   : > { %v1846_v19 = vpop.eup %1845  ;;  %1681 = vmatprep.subr.mxu1 %v819_v18 }
 0x389   : > { %v1848_v20 = vpop.eup %1847  ;;  %v1004_v21 = vsel %vm518_vm2, %v1846_v19, 0.0 }
 0x38a   : > { %1005 = vadd.xlane.f32.xlu1 %v1004_v21  ;;  %v1001_v22 = vsel %vm518_vm2, %v1848_v20, 0.0 }
 0x38b   : > { %1002 = vadd.xlane.f32.xlu0 %v1001_v22 }
 0x38f   : > { %v1850_v23 = vpop.eup %1849 }
 0x390   : > { %v1852_v24 = vpop.eup %1851  ;;  %v1197_v25 = vsel %vm518_vm2, %v1850_v23, 0.0 }
 0x391   : > { %1198 = vadd.xlane.f32.xlu1 %v1197_v25  ;;  %v1194_v26 = vsel %vm518_vm2, %v1852_v24, 0.0 }
 0x392   : > { %1195 = vadd.xlane.f32.xlu0 %v1194_v26 }
 0x3a2   : > { %1011 = vrot.lane.b32.xlu1 %v2421_v17, %s2108_s10 }
 0x3a8   : > { %1204 = vrot.lane.b32.xlu0 %v2421_v17, %s2109_s13 }
 0x3b5   : > { %v620_v27 = vpop.xlane.xlu1 %619 }
 0x3b6   : > { %1853 = vrcp.f32 %v620_v27  ;;  %v617_v28 = vpop.xlane.xlu0 %616 }
 0x3b7   : > { %1855 = vrcp.f32 %v617_v28 }
 0x3c0   : > { %v1854_v29 = vpop.eup %1853 }
 0x3c1   : > { %v1856_v30 = vpop.eup %1855  ;;  %v624_v32 = vmul.f32 %v1854_v29, %v2454_v54  ;;  %v1320_v54 = vld [vmem:[#allocation10] sm:$0xff] }
 0x3c2   : > { %v623_v31 = vmul.f32 %v1856_v30, %v1840_v55  ;;  %v1321_v55 = vld [vmem:[#allocation10 + $0x8] sm:$0xff] }
 0x3c3   : > { %v1731_v56 = vpack.c.bf16 %v1321_v55, %v1320_v54 }
 0x3c4   : > { %1673 = vmatprep.mubr.msk.f32.mxu1 %vm518_vm2, %v623_v31 }
 0x3c5   : > { %1674 = vmatmul.mubr.msk.f32.vlgmr.msra.gmra.mrb[4].mxu1 %vm518_vm2, %v624_v32  ;;  %1732 = vmatprep.subr.bf16.mxu0 %v1731_v56 }
 0x3c6   : > { %1682 = vmatpush3.msra.mxu1 %v819_v18  ;;  %1734 = vmatpush3.bf16.msra.mxu0 %v1731_v56 }
 0x3c7   : > { %1736 = vmatprep.subr.bf16.mxu0 %v1735_v59 }
 0x3ca   : > { %1738 = vmatpush3.bf16.msra.mxu0 %v1735_v59 }
 0x413   : > { %v813_v33 = vpop.xlane.xlu1 %812 }
 0x414   : > { %1857 = vrcp.f32 %v813_v33  ;;  %v810_v34 = vpop.xlane.xlu0 %809 }
 0x415   : > { %1859 = vrcp.f32 %v810_v34 }
 0x417   : > { %v1006_v35 = vpop.xlane.xlu1 %1005 }
 0x418   : > { %1861 = vrcp.f32 %v1006_v35  ;;  %v1003_v17 = vpop.xlane.xlu0 %1002 }
 0x419   : > { %1863 = vrcp.f32 %v1003_v17 }
 0x41e   : > { %v1858_v36 = vpop.eup %1857  ;;  %v1199_v37 = vpop.xlane.xlu1 %1198 }
 0x41f   : > { %v1860_v38 = vpop.eup %1859  ;;  %1865 = vrcp.f32 %v1199_v37  ;;  %v1196_v39 = vpop.xlane.xlu0 %1195  ;;  %v817_v41 = vmul.f32 %v1858_v36, %v1842_v11 }
 0x420   : > { %1867 = vrcp.f32 %v1196_v39  ;;  %v816_v40 = vmul.f32 %v1860_v38, %v1844_v13 }
 0x422   : > { %v1862_v42 = vpop.eup %1861  ;;  %1683 = vmatprep.mubr.msk.f32.mxu1 %vm518_vm2, %v816_v40  ;;  %v1012_v43 = vpop.permute.xlu1 %1011 }
 0x423   : > { %v1864_v44 = vpop.eup %1863  ;;  %v1205_v45 = vpop.permute.xlu0 %1204  ;;  %1684 = vmatmul.mubr.msk.f32.vlgmr.msra.gmra.mrb[6].mxu1 %vm518_vm2, %v817_v41  ;;  %1691 = vmatprep.subr.mxu1 %v1012_v43  ;;  %v1010_v47 = vmul.f32 %v1862_v42, %v1846_v19 }
 0x424   : > { %1692 = vmatpush3.msra.mxu1 %v1012_v43  ;;  %v1009_v46 = vmul.f32 %v1864_v44, %v1848_v20 }
 0x425   : > { %1701 = vmatprep.subr.mxu1 %v1205_v45 }
 0x426   : > { %1693 = vmatprep.mubr.msk.f32.mxu1 %vm518_vm2, %v1009_v46 }
 0x427   : > { %1694 = vmatmul.mubr.msk.f32.vlgmr.msra.gmra.mrb[8].mxu1 %vm518_vm2, %v1010_v47 }
 0x428   : > { %1702 = vmatpush3.msra.mxu1 %v1205_v45 }
 0x429   : > { %v1866_v48 = vpop.eup %1865 }
 0x42a   : > { %v1868_v49 = vpop.eup %1867  ;;  %v1203_v51 = vmul.f32 %v1866_v48, %v1850_v23 }
 0x42b   : > { %v1202_v50 = vmul.f32 %v1868_v49, %v1852_v24 }
 0x42d   : > { %1703 = vmatprep.mubr.msk.f32.mxu1 %vm518_vm2, %v1202_v50 }
 0x42e   : > { %1704 = vmatmul.mubr.msk.f32.vlgmr.msra.gmra.mrb[10].mxu1 %vm518_vm2, %v1203_v51 }
 0x498   : > { %v1675_v52 = vpop.f32.mrb[4].mxu1 }
 0x499   : > { %v700_v53 = vpop.f32.mrb[5].mxu1 }
 0x4f6   : > { %v1685_v60 = vpop.f32.mrb[6].mxu1 }
 0x4f7   : > { %1292 = vrot.lane.b32.xlu0 %v1685_v60, %s2110_s2  ;;  %v893_v61 = vpop.f32.mrb[7].mxu1 }
 0x4f8   : > { %1290 = vrot.lane.b32.xlu1 %v893_v61, %s2110_s2 }
 0x4fa   : > { %v1695_v62 = vpop.f32.mrb[8].mxu1 }
 0x4fb   : > { %1300 = vrot.lane.b32.xlu0 %v1695_v62, %s2111_s30  ;;  %v1086_v63 = vpop.f32.mrb[9].mxu1 }
 0x4fc   : > { %1298 = vrot.lane.b32.xlu1 %v1086_v63, %s2111_s30 }
 0x501   : > { %v1705_v0 = vpop.f32.mrb[10].mxu1 }
 0x502   : > { %1308 = vrot.lane.b32.xlu0 %v1705_v0, %s2112_s19  ;;  %v1279_v1 = vpop.f32.mrb[11].mxu1 }
 0x503   : > { %1306 = vrot.lane.b32.xlu1 %v1279_v1, %s2112_s19 }
 0x569   : > { %v1293_v2 = vpop.permute.xlu0 %1292 }
 0x56a   : > { %v1291_v3 = vpop.permute.xlu1 %1290  ;;  %v1313_v8 = vsel %vm518_vm2, %v1675_v52, %v1293_v2 }
 0x56b   : > { %v1312_v6 = vsel %vm518_vm2, %v700_v53, %v1291_v3 }
 0x56d   : > { %v1301_v4 = vpop.permute.xlu0 %1300 }
 0x56e   : > { %v1299_v5 = vpop.permute.xlu1 %1298  ;;  %v1316_v11 = vsel %vm1314_vm3, %v1313_v8, %v1301_v4 }
 0x56f   : > { %v1315_v9 = vsel %vm1314_vm3, %v1312_v6, %v1299_v5 }
 0x574   : > { %v1309_v7 = vpop.permute.xlu0 %1308 }
 0x575   : > { %v1307_v10 = vpop.permute.xlu1 %1306  ;;  %v1319_v13 = vsel %vm1317_vm4, %v1316_v11, %v1309_v7 }
 0x576   : > { %v1318_v12 = vsel %vm1317_vm4, %v1315_v9, %v1307_v10 }
 0x577   : > { %1714 = vmatprep.mubr.msk.f32.mxu0 %vm357_vm1, %v1318_v12 }
 0x578   : > { %1715 = vmatmul.mubr.msk.f32.vlgmr.msra.gmra.mrb[8].mxu0 %vm357_vm1, %v1319_v13 }
 0x64b   : > { %v1716_v15 = vpop.f32.mrb[8].mxu0 }
 0x64c   : > { %v1409_v16 = vadd.f32 %v1716_v15, %v1593_v14  ;;  %v1403_v18 = vpop.f32.mrb[9].mxu0 }
 0x64d   : > { %v1404_v19 = vadd.f32 %v1593_v14, %v1403_v18 }
 0x64e   : > { %1413 = vst.msk [vmem:[%s349_s20 + $0x8] sm:$0xff] %vm357_vm1, %v1409_v16 }
 0x64f   : > { %1412 = vst.msk [vmem:[%s349_s20] sm:$0xff] %vm357_vm1, %v1404_v19 }
 0x650   : > { %2026 = shalt.err (!%p2023_p10)
}
 0x651   : > { %s2027_s26 = scalar_lea.hbm %s2493_s27, 256  ;;  %s2031_s30 = scalar_lea.hbm %s2546_s6, 512 }
 0x652   : > { %p2028_p13 = scmp.ne.s32.totalorder %s2493_s27, %s2027_s26  ;;  %p2032_p9 = scmp.lt.u32.totalorder %s2493_s27, %s2546_s6 }
 0x653   : > { %p2033_p3 = scmp.lt.u32.totalorder %s2031_s30, %s2027_s26  ;;  %p2035_p12 = scmp.lt.u32.totalorder %s2027_s26, %s2493_s27 }
 0x654   : > { %p2029_p5 = pnand %p2028_p13, %p2576_p1 }
 0x655   : > { %p2034_p7 = por %p2033_p3, %p2032_p9 }
 0x656   : > { %p2030_p11 = pneg %p2029_p5 }
 0x657   : > { %p2036_p2 = por %p2035_p12, %p2034_p7 }
 0x659   : > { %p2037_p4 = pnand %p2036_p2, %p2030_p11 }
 0x65b   : > { %2040 = shalt.err (!%p2037_p4)
}
 0x65c   : > { %s2114_s12 = smov 128  }
 0x65d   : > { %1755 = dma.vmem_to_hbm [thread:$0]  (%p2576_p1), %s2488_s0, 256, %s2493_s27, %s1415_s8, %s2114_s12, %s2114_s12, %s2110_s2  }
 0x65e PF: > { %s1443_s20 = sand.u32 1, %s2079_s21   ;;  %p2577_p0 = scmp.ne.s32.totalorder %s2557_s28, 0 }
 0x65f   : > { %p2578_p8 = scmp.ge.s32.totalorder %s2091_s24, 2  ;;  %s1444_s3 = scalar_lea.sflag [#allocation4], %s1443_s20 }
 0x661   : > { %p1775_p6 = pnand %p2578_p8, %p2577_p0 }
 0x663   : > { %2074 = dma.done.wait (!%p1775_p6), %s1444_s3, 256  }
 0x664   : > { %2076 = vsyncadd (!%p1775_p6), %s1444_s3, 4294967040  ;;  %p23_p10 = scmp.ge.s32.totalorder %s2290_s18, 4   ;;  %s2579_s21 = smov %s2083_s22 }
 0x665   : > { %s2580_s22 = smov %s2087_s23  ;;  %s2581_s23 = smov %s2300_s14 }
 0x666   : > { %s2582_s24 = smov %s2290_s18  ;;  %25 = sbr.rel (!%p23_p10) target bundleno = 13 (0xd), region = 114 }
 0x66d   :  { %1449 = vsyncpa [#allocation3], 1 }
 0x66e   :  { %1451 = vsyncpa [#allocation3 + $0x1], 1 }
 0x66f   :  { %1452 = vsyncpa [#allocation6], 1 }
 0x670   :  { %1454 = vsyncpa [#allocation6 + $0x1], 1 }
 0x671   :  { %1455 = vsyncpa [#allocation9], 1 }
 0x672   :  { %1456 = vsyncpa [#allocation4], 1 }
 0x673   :  { %1458 = vsyncpa [#allocation4 + $0x1], 1 }

</bundles_post_ra>
